<compile_context>
chip_gen: v6e
topology: v6e:2x2x1
jax: 0.10.0
libtpu: 0.0.40
codegen_flags: <defaults>
</compile_context>

<pallas_src>
import jax
import jax.numpy as jnp
from jax.experimental import pallas as pl
from jax.experimental.pallas import tpu as pltpu

BN_EPS = 1e-5
LANE = 128


def _round_up(a, b):
    return (a + b - 1) // b * b


# ---------------------------------------------------------------------------
# Kernel: one batch tile, all four (BN-folded) Linear layers fused.
# ---------------------------------------------------------------------------
def mlp_kernel(x_ref, w1_ref, b1_ref, w2_ref, b2_ref, w3_ref, b3_ref,
               w4_ref, b4_ref, out_ref):
    # x_ref: [tile_n, C_in_p] bf16 ; w*: [K_p, M_p] bf16 ; b*: [1, M_p] f32
    h = x_ref[...]

    # Linear 1 (BatchNorm folded in) -> (Dropout = id) -> ReLU
    h = jnp.dot(h, w1_ref[...], preferred_element_type=jnp.float32) + b1_ref[...]
    h = jnp.maximum(h, 0.0).astype(jnp.bfloat16)

    # Linear 2 -> (Dropout = id) -> ReLU
    h = jnp.dot(h, w2_ref[...], preferred_element_type=jnp.float32) + b2_ref[...]
    h = jnp.maximum(h, 0.0).astype(jnp.bfloat16)

    # Linear 3 -> (Dropout = id) -> ReLU
    h = jnp.dot(h, w3_ref[...], preferred_element_type=jnp.float32) + b3_ref[...]
    h = jnp.maximum(h, 0.0).astype(jnp.bfloat16)

    # Linear 4 (output)
    h = jnp.dot(h, w4_ref[...], preferred_element_type=jnp.float32) + b4_ref[...]

    out_ref[...] = h.astype(out_ref.dtype)


# ---------------------------------------------------------------------------
# One-time host-side parameter transform: fold BN, pad to lane multiples, bf16.
# ---------------------------------------------------------------------------
def fold_and_pack(params):
    s = params["gamma"] * jax.lax.rsqrt(params["var"] + BN_EPS)   # (1, C_in)
    t = params["beta"] - params["mean"] * s                       # (1, C_in)
    w1 = params["w1"] * s.reshape(-1, 1)                          # scale rows of w1
    b1 = params["b1"] + t @ params["w1"]

    def pad_w(w):
        ki, ko = w.shape
        wp = jnp.zeros((_round_up(ki, LANE), _round_up(ko, LANE)), jnp.float32)
        return wp.at[:ki, :ko].set(w).astype(jnp.bfloat16)

    def pad_b(b):
        n = b.shape[-1]
        bp = jnp.zeros((1, _round_up(n, LANE)), jnp.float32)
        return bp.at[:, :n].set(b.reshape(1, -1))

    return dict(
        w1=pad_w(w1), b1=pad_b(b1),
        w2=pad_w(params["w2"]), b2=pad_b(params["b2"]),
        w3=pad_w(params["w3"]), b3=pad_b(params["b3"]),
        w4=pad_w(params["w4"]), b4=pad_b(params["b4"]),
        c_in=params["w1"].shape[0],
        c_out=params["w4"].shape[1],
    )


# ---------------------------------------------------------------------------
# Wrapper: batch tiling + padding + pallas_call.
# ---------------------------------------------------------------------------
def mlp_forward(x, packed, *, tile_n=512):
    """x: [N, C_in] float32.  packed: output of fold_and_pack()."""
    N, C_in = x.shape
    C_in_p, H_p = packed["w1"].shape
    H2_p = packed["w2"].shape[1]
    C_out_p = packed["w4"].shape[1]
    C_out = packed["c_out"]
    assert C_in == packed["c_in"]

    # Batch tile: big and lane-friendly, but capped so tiny batches don't over-pad.
    tile_n = max(8, min(_round_up(tile_n, 8), _round_up(N, 8)))
    N_p = _round_up(N, tile_n)
    grid = (N_p // tile_n,)

    # Zero-pad batch rows / feature columns; bf16 for the MXU (f32 accumulate in-kernel).
    xp = jnp.zeros((N_p, C_in_p), jnp.bfloat16).at[:N, :C_in].set(
        x.astype(jnp.bfloat16))

    def const_spec(shape):            # weights/biases: same block every grid step
        return pl.BlockSpec(shape, lambda i: (0, 0))

    out_p = pl.pallas_call(
        mlp_kernel,
        out_shape=jax.ShapeDtypeStruct((N_p, C_out_p), jnp.float32),
        grid_spec=pltpu.PrefetchScalarGridSpec(
            num_scalar_prefetch=0,
            grid=grid,
            in_specs=[
                pl.BlockSpec((tile_n, C_in_p), lambda i: (i, 0)),      # x tile
                const_spec((C_in_p, H_p)),   const_spec((1, H_p)),     # w1, b1
                const_spec((H_p, H2_p)),     const_spec((1, H2_p)),    # w2, b2
                const_spec((H2_p, H2_p)),    const_spec((1, H2_p)),    # w3, b3
                const_spec((H2_p, C_out_p)), const_spec((1, C_out_p)), # w4, b4
            ],
            out_specs=pl.BlockSpec((tile_n, C_out_p), lambda i: (i, 0)),
        ),
        compiler_params=pltpu.CompilerParams(
            dimension_semantics=("parallel",)),
    )(xp, packed["w1"], packed["b1"], packed["w2"], packed["b2"],
      packed["w3"], packed["b3"], packed["w4"], packed["b4"])

    return out_p[:N, :C_out]


# ---------------------------------------------------------------------------
# Parameter construction + references.
# ---------------------------------------------------------------------------
def init_params(key, n_input, n_hidden, n_out):
    """Deterministic synthetic parameters (not a checkpoint load)."""
    h2 = n_hidden // 2
    ks = jax.random.split(key, 10)

    def lin(kw, kb, fan_in, fan_out):
        bound = 1.0 / jnp.sqrt(fan_in)
        w = jax.random.uniform(kw, (fan_in, fan_out), jnp.float32, -bound, bound)
        b = jax.random.uniform(kb, (1, fan_out), jnp.float32, -bound, bound)
        return w, b

    w1, b1 = lin(ks[0], ks[1], n_input, n_hidden)
    w2, b2 = lin(ks[2], ks[3], n_hidden, h2)
    w3, b3 = lin(ks[4], ks[5], h2, h2)
    w4, b4 = lin(ks[6], ks[7], h2, n_out)

    return dict(
        gamma=jnp.ones((1, n_input), jnp.float32),
        beta=jnp.zeros((1, n_input), jnp.float32),
        mean=0.1 * jax.random.normal(ks[8], (1, n_input), jnp.float32),
        var=jnp.abs(1.0 + 0.1 * jax.random.normal(ks[9], (1, n_input), jnp.float32)),
        w1=w1, b1=b1, w2=w2, b2=b2, w3=w3, b3=b3, w4=w4, b4=b4,
    )


def mlp_reference_f32(x, p):
    """Original (unfolded) eval-mode module semantics in f32."""
    h = (x - p["mean"]) * jax.lax.rsqrt(p["var"] + BN_EPS) * p["gamma"] + p["beta"]
    h = jnp.maximum(h @ p["w1"] + p["b1"], 0.0)
    h = jnp.maximum(h @ p["w2"] + p["b2"], 0.0)
    h = jnp.maximum(h @ p["w3"] + p["b3"], 0.0)
    return h @ p["w4"] + p["b4"]


def mlp_reference_packed(x, packed):
    """Exact mirror of the kernel math (folded BN, bf16 matmul inputs, f32 acc)."""
    N, C_in = x.shape
    C_in_p = packed["w1"].shape[0]
    h = jnp.zeros((N, C_in_p), jnp.bfloat16).at[:, :C_in].set(x.astype(jnp.bfloat16))
    for wk, bk, act in (("w1", "b1", True), ("w2", "b2", True),
                        ("w3", "b3", True), ("w4", "b4", False)):
        h = jnp.dot(h, packed[wk], preferred_element_type=jnp.float32) + packed[bk]
        if act:
            h = jnp.maximum(h, 0.0).astype(jnp.bfloat16)
    return h[:, :packed["c_out"]]


if __name__ == "__main__":
    n_input, n_hidden, n_out = 16, 32, 8
    batch = 20   # deliberately NOT a multiple of 8/tile -> exercises tail padding

    key = jax.random.PRNGKey(0)
    kx, kp = jax.random.split(key)
    x = jax.random.normal(kx, (batch, n_input), jnp.float32)

    params = init_params(kp, n_input, n_hidden, n_out)
    packed = fold_and_pack(params)

    out = mlp_forward(x, packed)
    out = jax.block_until_ready(out)
    assert out.shape == (batch, n_out)

    # Tight check: identical math (folded BN, bf16 operands, f32 accumulation) via XLA.
    ref_exact = mlp_reference_packed(x, packed)
    assert jnp.allclose(out, ref_exact, atol=2e-3, rtol=2e-3)

    # Loose check against the original f32 eval-mode module (difference is only
    # bf16 rounding of weights/activations).
    ref_f32 = mlp_reference_f32(x, params)
    assert jnp.allclose(out, ref_f32, atol=5e-2, rtol=5e-2)

    print("KERNEL_OK")
</pallas_src>

<mosaic_0001>
module attributes {stable_mosaic.version = 11 : i64} {
  func.func @mlp_kernel(%arg0: i32, %arg1: memref<24x128xbf16, #tpu.memory_space<vmem>>, %arg2: memref<128x128xbf16, #tpu.memory_space<vmem>>, %arg3: memref<1x128xf32, #tpu.memory_space<vmem>>, %arg4: memref<128x128xbf16, #tpu.memory_space<vmem>>, %arg5: memref<1x128xf32, #tpu.memory_space<vmem>>, %arg6: memref<128x128xbf16, #tpu.memory_space<vmem>>, %arg7: memref<1x128xf32, #tpu.memory_space<vmem>>, %arg8: memref<128x128xbf16, #tpu.memory_space<vmem>>, %arg9: memref<1x128xf32, #tpu.memory_space<vmem>>, %arg10: memref<24x128xf32, #tpu.memory_space<vmem>>) attributes {dimension_semantics = [#tpu.dimension_semantics<parallel>], iteration_bounds = array<i64: 1>, scalar_prefetch = 0 : i64, scratch_operands = 0 : i64, tpu.core_type = #tpu.core_type<tc>, window_params = [{transform_indices = @transform_0, window_bounds = array<i64: 24, 128>}, {pipeline_mode = #tpu.pipeline_mode<synchronous>, transform_indices = @transform_1, window_bounds = array<i64: 128, 128>}, {pipeline_mode = #tpu.pipeline_mode<synchronous>, transform_indices = @transform_2, window_bounds = array<i64: 1, 128>}, {pipeline_mode = #tpu.pipeline_mode<synchronous>, transform_indices = @transform_3, window_bounds = array<i64: 128, 128>}, {pipeline_mode = #tpu.pipeline_mode<synchronous>, transform_indices = @transform_4, window_bounds = array<i64: 1, 128>}, {pipeline_mode = #tpu.pipeline_mode<synchronous>, transform_indices = @transform_5, window_bounds = array<i64: 128, 128>}, {pipeline_mode = #tpu.pipeline_mode<synchronous>, transform_indices = @transform_6, window_bounds = array<i64: 1, 128>}, {pipeline_mode = #tpu.pipeline_mode<synchronous>, transform_indices = @transform_7, window_bounds = array<i64: 128, 128>}, {pipeline_mode = #tpu.pipeline_mode<synchronous>, transform_indices = @transform_8, window_bounds = array<i64: 1, 128>}, {transform_indices = @transform_9, window_bounds = array<i64: 24, 128>}]} {
    %c0 = arith.constant 0 : index
    %c0_0 = arith.constant 0 : index
    %0 = vector.load %arg1[%c0, %c0_0] : memref<24x128xbf16, #tpu.memory_space<vmem>>, vector<24x128xbf16>
    %c0_1 = arith.constant 0 : index
    %c0_2 = arith.constant 0 : index
    %1 = vector.load %arg2[%c0_1, %c0_2] : memref<128x128xbf16, #tpu.memory_space<vmem>>, vector<128x128xbf16>
    %cst = arith.constant dense<0.000000e+00> : vector<24x128xf32>
    %2 = tpu.matmul %0, %1, %cst {dimension_numbers = #tpu.dot_dimension_numbers<[1], [0], [0], [1], [0, 0, 1, 1], [], []>} : vector<24x128xbf16>, vector<128x128xbf16>, vector<24x128xf32> -> vector<24x128xf32>
    %c0_3 = arith.constant 0 : index
    %c0_4 = arith.constant 0 : index
    %3 = vector.load %arg3[%c0_3, %c0_4] : memref<1x128xf32, #tpu.memory_space<vmem>>, vector<1x128xf32>
    %4 = vector.broadcast %3 : vector<1x128xf32> to vector<24x128xf32>
    %5 = arith.addf %2, %4 : vector<24x128xf32>
    %cst_5 = arith.constant 0.000000e+00 : f32
    %6 = vector.broadcast %cst_5 : f32 to vector<24x128xf32>
    %7 = arith.maximumf %5, %6 : vector<24x128xf32>
    %8 = arith.truncf %7 : vector<24x128xf32> to vector<24x128xbf16>
    %c0_6 = arith.constant 0 : index
    %c0_7 = arith.constant 0 : index
    %9 = vector.load %arg4[%c0_6, %c0_7] : memref<128x128xbf16, #tpu.memory_space<vmem>>, vector<128x128xbf16>
    %cst_8 = arith.constant dense<0.000000e+00> : vector<24x128xf32>
    %10 = tpu.matmul %8, %9, %cst_8 {dimension_numbers = #tpu.dot_dimension_numbers<[1], [0], [0], [1], [0, 0, 1, 1], [], []>} : vector<24x128xbf16>, vector<128x128xbf16>, vector<24x128xf32> -> vector<24x128xf32>
    %c0_9 = arith.constant 0 : index
    %c0_10 = arith.constant 0 : index
    %11 = vector.load %arg5[%c0_9, %c0_10] : memref<1x128xf32, #tpu.memory_space<vmem>>, vector<1x128xf32>
    %12 = vector.broadcast %11 : vector<1x128xf32> to vector<24x128xf32>
    %13 = arith.addf %10, %12 : vector<24x128xf32>
    %cst_11 = arith.constant 0.000000e+00 : f32
    %14 = vector.broadcast %cst_11 : f32 to vector<24x128xf32>
    %15 = arith.maximumf %13, %14 : vector<24x128xf32>
    %16 = arith.truncf %15 : vector<24x128xf32> to vector<24x128xbf16>
    %c0_12 = arith.constant 0 : index
    %c0_13 = arith.constant 0 : index
    %17 = vector.load %arg6[%c0_12, %c0_13] : memref<128x128xbf16, #tpu.memory_space<vmem>>, vector<128x128xbf16>
    %cst_14 = arith.constant dense<0.000000e+00> : vector<24x128xf32>
    %18 = tpu.matmul %16, %17, %cst_14 {dimension_numbers = #tpu.dot_dimension_numbers<[1], [0], [0], [1], [0, 0, 1, 1], [], []>} : vector<24x128xbf16>, vector<128x128xbf16>, vector<24x128xf32> -> vector<24x128xf32>
    %c0_15 = arith.constant 0 : index
    %c0_16 = arith.constant 0 : index
    %19 = vector.load %arg7[%c0_15, %c0_16] : memref<1x128xf32, #tpu.memory_space<vmem>>, vector<1x128xf32>
    %20 = vector.broadcast %19 : vector<1x128xf32> to vector<24x128xf32>
    %21 = arith.addf %18, %20 : vector<24x128xf32>
    %cst_17 = arith.constant 0.000000e+00 : f32
    %22 = vector.broadcast %cst_17 : f32 to vector<24x128xf32>
    %23 = arith.maximumf %21, %22 : vector<24x128xf32>
    %24 = arith.truncf %23 : vector<24x128xf32> to vector<24x128xbf16>
    %c0_18 = arith.constant 0 : index
    %c0_19 = arith.constant 0 : index
    %25 = vector.load %arg8[%c0_18, %c0_19] : memref<128x128xbf16, #tpu.memory_space<vmem>>, vector<128x128xbf16>
    %cst_20 = arith.constant dense<0.000000e+00> : vector<24x128xf32>
    %26 = tpu.matmul %24, %25, %cst_20 {dimension_numbers = #tpu.dot_dimension_numbers<[1], [0], [0], [1], [0, 0, 1, 1], [], []>} : vector<24x128xbf16>, vector<128x128xbf16>, vector<24x128xf32> -> vector<24x128xf32>
    %c0_21 = arith.constant 0 : index
    %c0_22 = arith.constant 0 : index
    %27 = vector.load %arg9[%c0_21, %c0_22] : memref<1x128xf32, #tpu.memory_space<vmem>>, vector<1x128xf32>
    %28 = vector.broadcast %27 : vector<1x128xf32> to vector<24x128xf32>
    %29 = arith.addf %26, %28 : vector<24x128xf32>
    %c0_23 = arith.constant 0 : index
    %c0_24 = arith.constant 0 : index
    %30 = vector.load %arg10[%c0_23, %c0_24] : memref<24x128xf32, #tpu.memory_space<vmem>>, vector<24x128xf32>
    tpu.vector_store %arg10[%c0_23, %c0_24], %29 {strides = array<i32>} : memref<24x128xf32, #tpu.memory_space<vmem>>, vector<24x128xf32>,
    return
  }
  func.func @transform_0(%arg0: i32) -> (i32, i32) {
    %c0_i32 = arith.constant 0 : i32
    %c0_i32_0 = arith.constant 0 : i32
    return %arg0, %c0_i32 : i32, i32
  }
  func.func @transform_1(%arg0: i32) -> (i32, i32) {
    %c0_i32 = arith.constant 0 : i32
    %c0_i32_0 = arith.constant 0 : i32
    %c0_i32_1 = arith.constant 0 : i32
    return %c0_i32, %c0_i32_0 : i32, i32
  }
  func.func @transform_2(%arg0: i32) -> (i32, i32) {
    %c0_i32 = arith.constant 0 : i32
    %c0_i32_0 = arith.constant 0 : i32
    %c0_i32_1 = arith.constant 0 : i32
    return %c0_i32, %c0_i32_0 : i32, i32
  }
  func.func @transform_3(%arg0: i32) -> (i32, i32) {
    %c0_i32 = arith.constant 0 : i32
    %c0_i32_0 = arith.constant 0 : i32
    %c0_i32_1 = arith.constant 0 : i32
    return %c0_i32, %c0_i32_0 : i32, i32
  }
  func.func @transform_4(%arg0: i32) -> (i32, i32) {
    %c0_i32 = arith.constant 0 : i32
    %c0_i32_0 = arith.constant 0 : i32
    %c0_i32_1 = arith.constant 0 : i32
    return %c0_i32, %c0_i32_0 : i32, i32
  }
  func.func @transform_5(%arg0: i32) -> (i32, i32) {
    %c0_i32 = arith.constant 0 : i32
    %c0_i32_0 = arith.constant 0 : i32
    %c0_i32_1 = arith.constant 0 : i32
    return %c0_i32, %c0_i32_0 : i32, i32
  }
  func.func @transform_6(%arg0: i32) -> (i32, i32) {
    %c0_i32 = arith.constant 0 : i32
    %c0_i32_0 = arith.constant 0 : i32
    %c0_i32_1 = arith.constant 0 : i32
    return %c0_i32, %c0_i32_0 : i32, i32
  }
  func.func @transform_7(%arg0: i32) -> (i32, i32) {
    %c0_i32 = arith.constant 0 : i32
    %c0_i32_0 = arith.constant 0 : i32
    %c0_i32_1 = arith.constant 0 : i32
    return %c0_i32, %c0_i32_0 : i32, i32
  }
  func.func @transform_8(%arg0: i32) -> (i32, i32) {
    %c0_i32 = arith.constant 0 : i32
    %c0_i32_0 = arith.constant 0 : i32
    %c0_i32_1 = arith.constant 0 : i32
    return %c0_i32, %c0_i32_0 : i32, i32
  }
  func.func @transform_9(%arg0: i32) -> (i32, i32) {
    %c0_i32 = arith.constant 0 : i32
    %c0_i32_0 = arith.constant 0 : i32
    return %arg0, %c0_i32 : i32, i32
  }
}

</mosaic_0001>

<bundles_post_ra>
// kernel: tpu_custom_call.1
= control target key start
LH: loop header
LB: loop body
LE: loop exit
PB: predicated region body
PF: predicated region fallthrough
CT: control target
= control target key end

     0   :  { %14 = vsyncpa [#allocation3], 0  ;;  %s1063_s0 = inlined_call_operand.hbm [shape: bf16[24,128], index: 0, kind: input, shape index: {}]   ;;  %s1064_s1 = inlined_call_operand.hbm [shape: bf16[128,128], index: 1, kind: input, shape index: {}]   ;;  %s1065_s2 = inlined_call_operand.vmem [shape: f32[1,128], index: 2, kind: input, shape index: {}]   ;;  %s1066_s3 = inlined_call_operand.hbm [shape: bf16[128,128], index: 3, kind: input, shape index: {}]   ;;  %s1067_s4 = inlined_call_operand.vmem [shape: f32[1,128], index: 4, kind: input, shape index: {}]   ;;  %s1068_s5 = inlined_call_operand.hbm [shape: bf16[128,128], index: 5, kind: input, shape index: {}]   ;;  %s1069_s6 = inlined_call_operand.vmem [shape: f32[1,128], index: 6, kind: input, shape index: {}]   ;;  %s1070_s7 = inlined_call_operand.hbm [shape: bf16[128,128], index: 7, kind: input, shape index: {}]   ;;  %s1071_s8 = inlined_call_operand.vmem [shape: f32[1,128], index: 8, kind: input, shape index: {}]   ;;  %s1072_s9 = inlined_call_operand.hbm [shape: f32[24,128], index: 9, kind: output, shape index: {}]  }
   0x1   :  { %15 = vsyncpa [#allocation6], 0 }
   0x2   :  { %16 = vsyncpa [#allocation9], 0 }
   0x3   :  { %17 = vsyncpa [#allocation4], 0  ;;  %s958_s30 = smov [#allocation5]   ;;  %s959_s11 = smov [#allocation8]  }
   0x4   :  { %s35_s10 = sshll.u32 %s958_s30, 4  ;;  %s63_s12 = sshll.u32 %s959_s11, 4  ;;  %s36_s10 = int_to_ptr.vmem [resolvable:$true] %s35_s10  ;;  %s64_s12 = int_to_ptr.vmem [resolvable:$true] %s63_s12 }
   0x5   :  { %s838_s13 = scalar_lea.vmem %s36_s10, 1024  ;;  %p843_p1 = scmp.lt.s32.totalorder %s36_s10, %s36_s10 }
   0x6   :  { %p839_p0 = scmp.ne.s32.totalorder %s36_s10, %s838_s13  ;;  %p844_p2 = scmp.lt.s32.totalorder %s838_s13, %s838_s13 }
   0x8   :  { %p845_p3 = por %p844_p2, %p843_p1 }
   0xa   :  { %p846_p4 = pnand %p845_p3, %p839_p0 }
   0xc   :  { %849 = shalt.err (!%p846_p4)
}
   0xd   :  { %s960_s14 = smov 64   ;;  %s961_s15 = smov 4  }
   0xe   :  { %41 = dma.hbm_to_vmem [thread:$0]  %s1064_s1, 1024, %s36_s10, [#allocation6], %s960_s14, %s960_s14, %s961_s15  }
   0xf   :  { %s858_s18 = scalar_lea.vmem %s64_s12, 1024  ;;  %p863_p6 = scmp.lt.s32.totalorder %s64_s12, %s64_s12 }
  0x10   :  { %p859_p5 = scmp.ne.s32.totalorder %s64_s12, %s858_s18  ;;  %p864_p7 = scmp.lt.s32.totalorder %s858_s18, %s858_s18 }
  0x12   :  { %p865_p8 = por %p864_p7, %p863_p6 }
  0x14   :  { %p866_p9 = pnand %p865_p8, %p859_p5 }
  0x16   :  { %869 = shalt.err (!%p866_p9)
}
  0x17   :  { %69 = dma.hbm_to_vmem [thread:$0]  %s1068_s5, 1024, %s64_s12, [#allocation9], %s960_s14, %s960_s14, %s961_s15  }
  0x18   :  { %s962_s21 = smov [#allocation2]   ;;  %s963_s23 = smov [#allocation7]  }
  0x19   :  { %s23_s22 = sshll.u32 %s962_s21, 4  ;;  %s49_s24 = sshll.u32 %s963_s23, 4  ;;  %s24_s22 = int_to_ptr.vmem [resolvable:$true] %s23_s22  ;;  %s50_s24 = int_to_ptr.vmem [resolvable:$true] %s49_s24 }
  0x1a   :  { %s878_s1 = scalar_lea.vmem %s24_s22, 192  ;;  %p883_p11 = scmp.lt.s32.totalorder %s24_s22, %s24_s22 }
  0x1b   :  { %p879_p10 = scmp.ne.s32.totalorder %s24_s22, %s878_s1  ;;  %p884_p12 = scmp.lt.s32.totalorder %s878_s1, %s878_s1 }
  0x1d   :  { %p885_p13 = por %p884_p12, %p883_p11 }
  0x1f   :  { %p886_p0 = pnand %p885_p13, %p879_p10 }
  0x21   :  { %889 = shalt.err (!%p886_p0)
}
  0x22   :  { %29 = dma.hbm_to_vmem [thread:$0]  %s1063_s0, 192, %s24_s22, [#allocation3], %s960_s14, %s960_s14, %s961_s15  }
  0x23   :  { %s898_s5 = scalar_lea.vmem %s50_s24, 1024  ;;  %p903_p2 = scmp.lt.s32.totalorder %s50_s24, %s50_s24 }
  0x24   :  { %p899_p1 = scmp.ne.s32.totalorder %s50_s24, %s898_s5  ;;  %p904_p3 = scmp.lt.s32.totalorder %s898_s5, %s898_s5 }
  0x26   :  { %p905_p4 = por %p904_p3, %p903_p2 }
  0x28   :  { %p906_p5 = pnand %p905_p4, %p899_p1 }
  0x2a   :  { %909 = shalt.err (!%p906_p5)
}
  0x2b   :  { %55 = dma.hbm_to_vmem [thread:$0]  %s1066_s3, 1024, %s50_s24, [#allocation6], %s960_s14, %s960_s14, %s961_s15  }
  0x2c   :  { %s964_s29 = smov [#allocation10]  }
  0x2d   :  { %s77_s30 = sshll.u32 %s964_s29, 4  ;;  %s78_s30 = int_to_ptr.vmem [resolvable:$true] %s77_s30 }
  0x2e   :  { %s918_s10 = scalar_lea.vmem %s78_s30, 1024  ;;  %p923_p7 = scmp.lt.s32.totalorder %s78_s30, %s78_s30 }
  0x2f   :  { %p919_p6 = scmp.ne.s32.totalorder %s78_s30, %s918_s10  ;;  %p924_p8 = scmp.lt.s32.totalorder %s918_s10, %s918_s10 }
  0x31   :  { %p925_p9 = por %p924_p8, %p923_p7 }
  0x33   :  { %p926_p10 = pnand %p925_p9, %p919_p6 }
  0x35   :  { %929 = shalt.err (!%p926_p10)
}
  0x36   :  { %83 = dma.hbm_to_vmem [thread:$0]  %s1070_s7, 1024, %s78_s30, [#allocation9], %s960_s14, %s960_s14, %s961_s15  }
  0x37   :  { %950 = dma.done.wait [#allocation3], 192  }
  0x38   :  { %951 = vsyncadd [#allocation3], 4294967104 }
  0x39   :  { %952 = dma.done.wait [#allocation6], 2048  }
  0x3a   :  { %953 = vsyncadd [#allocation6], 4294965248 }
  0x3b   :  { %954 = dma.done.wait [#allocation9], 2048  }
  0x3c   :  { %955 = vsyncadd [#allocation9], 4294965248  ;;  %v796_v0 = vld [vmem:[#allocation5 + $0x38] sm:$0xff]   ;;  %v797_v1 = vld [vmem:[#allocation5 + $0x30] sm:$0xff]  }
  0x3d   :  { %706 = vmatprep.subr.bf16.mxu0 %v796_v0  ;;  %v798_v2 = vld [vmem:[#allocation5 + $0x28] sm:$0xff]   ;;  %v799_v3 = vld [vmem:[#allocation5 + $0x20] sm:$0xff]   ;;  %v804_v4 = vld [vmem:[#allocation2] sm:$0xff]  }
  0x3e   :  { %707 = vmatpush3.bf16.msra.mxu0 %v796_v0  ;;  %722 = vmatprep.mubr.bf16.mxu0 %v804_v4  ;;  %v806_v5 = vld [vmem:[#allocation7 + $0x38] sm:$0xff]   ;;  %v807_v6 = vld [vmem:[#allocation7 + $0x30] sm:$0xff]   ;;  %v808_v9 = vld [vmem:[#allocation7 + $0x28] sm:$0xff]  }
  0x3f   :  { %708 = vmatprep.subr.bf16.mxu0 %v797_v1  ;;  %v800_v7 = vld [vmem:[#allocation5 + $0x18] sm:$0xff]   ;;  %726 = vmatprep.subr.bf16.mxu1 %v806_v5  ;;  %v801_v8 = vld [vmem:[#allocation5 + $0x10] sm:$0xff]   ;;  %v809_v10 = vld [vmem:[#allocation7 + $0x20] sm:$0xff]  }
  0x40   :  { %727 = vmatpush3.bf16.msra.mxu1 %v806_v5  ;;  %v802_v11 = vld [vmem:[#allocation5 + $0x8] sm:$0xff]   ;;  %v810_v12 = vld [vmem:[#allocation7 + $0x18] sm:$0xff]   ;;  %v803_v13 = vld [vmem:[#allocation5] sm:$0xff]  }
  0x41   :  { %728 = vmatprep.subr.bf16.mxu1 %v807_v6  ;;  %v805_v14 = vld [vmem:[#allocation2 + $0x8] ss:$0 sps:$4 sm:$0xff]   ;;  %v811_v15 = vld [vmem:[#allocation7 + $0x10] sm:$0xff]   ;;  %v812_v16 = vld [vmem:[#allocation7 + $0x8] sm:$0xff]  }
  0x42   :  { %709 = vmatpush3.bf16.msra.mxu0 %v797_v1  ;;  %v813_v17 = vld [vmem:[#allocation7] sm:$0xff]   ;;  %v814_v18 = vld [vmem:[#allocation8 + $0x38] sm:$0xff]   ;;  %v815_v19 = vld [vmem:[#allocation8 + $0x30] sm:$0xff]  }
  0x43   :  { %710 = vmatprep.subr.bf16.mxu0 %v798_v2  ;;  %v816_v20 = vld [vmem:[#allocation8 + $0x28] sm:$0xff]   ;;  %v817_v21 = vld [vmem:[#allocation8 + $0x20] sm:$0xff]   ;;  %v818_v22 = vld [vmem:[#allocation8 + $0x18] sm:$0xff]  }
  0x44   :  { %729 = vmatpush3.bf16.msra.mxu1 %v807_v6  ;;  %v628_v24 = vld [vmem:[%s1065_s2] ss:$0 sm:$0xff]  ;;  %v820_v37 = vld [vmem:[#allocation8 + $0x8] sm:$0xff]   ;;  %v821_v38 = vld [vmem:[#allocation8] sm:$0xff]  }
  0x45   :  { %730 = vmatprep.subr.bf16.mxu1 %v808_v9  ;;  %v819_v36 = vld [vmem:[#allocation8 + $0x10] sm:$0xff]   ;;  %v822_v39 = vld [vmem:[#allocation10 + $0x38] sm:$0xff]   ;;  %v824_v41 = vld [vmem:[#allocation10 + $0x28] sm:$0xff]  }
  0x46   :  { %711 = vmatpush3.bf16.msra.mxu0 %v798_v2  ;;  %v823_v40 = vld [vmem:[#allocation10 + $0x30] sm:$0xff]   ;;  %v825_v42 = vld [vmem:[#allocation10 + $0x20] sm:$0xff]   ;;  %v826_v43 = vld [vmem:[#allocation10 + $0x18] sm:$0xff]  }
  0x47   :  { %712 = vmatprep.subr.bf16.mxu0 %v799_v3  ;;  %v639_v45 = vld [vmem:[%s1067_s4] ss:$0 sm:$0xff]  ;;  %v828_v58 = vld [vmem:[#allocation10 + $0x8] sm:$0xff]   ;;  %v829_v59 = vld [vmem:[#allocation10] sm:$0xff]  }
  0x48   :  { %731 = vmatpush3.bf16.msra.mxu1 %v808_v9  ;;  %v827_v57 = vld [vmem:[#allocation10 + $0x10] sm:$0xff]  }
  0x49   :  { %732 = vmatprep.subr.bf16.mxu1 %v809_v10  ;;  %v648_v61 = vld [vmem:[%s1069_s6] ss:$0 sm:$0xff]  ;;  %s965_s6 = smov [#allocation11]  }
  0x4a   :  { %713 = vmatpush3.bf16.msra.mxu0 %v799_v3  ;;  %v657_v9 = vld [vmem:[%s1071_s8] ss:$0 sm:$0xff]  ;;  %s614_s16 = sshll.u32 %s965_s6, 4  ;;  %s615_s16 = int_to_ptr.vmem [resolvable:$true] %s614_s16 }
  0x4b   :  { %714 = vmatprep.subr.bf16.mxu0 %v800_v7  ;;  %s930_s17 = scalar_lea.vmem %s615_s16, 384  ;;  %p935_p12 = scmp.lt.s32.totalorder %s615_s16, %s615_s16 }
  0x4c   :  { %733 = vmatpush3.bf16.msra.mxu1 %v809_v10  ;;  %p931_p11 = scmp.ne.s32.totalorder %s615_s16, %s930_s17  ;;  %p936_p13 = scmp.lt.s32.totalorder %s930_s17, %s930_s17 }
  0x4d   :  { %734 = vmatprep.subr.bf16.mxu1 %v810_v12 }
  0x4e   :  { %715 = vmatpush3.bf16.msra.mxu0 %v800_v7  ;;  %p937_p0 = por %p936_p13, %p935_p12 }
  0x4f   :  { %716 = vmatprep.subr.bf16.mxu0 %v801_v8 }
  0x50   :  { %735 = vmatpush3.bf16.msra.mxu1 %v810_v12  ;;  %p938_p1 = pnand %p937_p0, %p931_p11 }
  0x51   :  { %736 = vmatprep.subr.bf16.mxu1 %v811_v15 }
  0x52   :  { %717 = vmatpush3.bf16.msra.mxu0 %v801_v8 }
  0x53   :  { %718 = vmatprep.subr.bf16.mxu0 %v802_v11 }
  0x54   :  { %737 = vmatpush3.bf16.msra.mxu1 %v811_v15 }
  0x55   :  { %738 = vmatprep.subr.bf16.mxu1 %v812_v16 }
  0x56   :  { %719 = vmatpush3.bf16.msra.mxu0 %v802_v11 }
  0x57   :  { %720 = vmatprep.subr.bf16.mxu0 %v803_v13 }
  0x58   :  { %739 = vmatpush3.bf16.msra.mxu1 %v812_v16 }
  0x59   :  { %740 = vmatprep.subr.bf16.mxu1 %v813_v17 }
  0x5a   :  { %721 = vmatpush3.bf16.msra.mxu0 %v803_v13 }
  0x5b   :  { %746 = vmatprep.subr.bf16.mxu0 %v814_v18 }
  0x5c   :  { %741 = vmatpush3.bf16.msra.mxu1 %v813_v17 }
  0x5d   :  { %723 = vmatmul.mubr.bf16.vlgmr.msra.gmra.mxu0 %v805_v14  ;;  %766 = vmatprep.subr.bf16.mxu1 %v822_v39 }
  0x5e   :  { %747 = vmatpush3.bf16.msra.mxu0 %v814_v18 }
  0x5f   :  { %748 = vmatprep.subr.bf16.mxu0 %v815_v19 }
  0x62   :  { %749 = vmatpush3.bf16.msra.mxu0 %v815_v19 }
  0x63   :  { %750 = vmatprep.subr.bf16.mxu0 %v816_v20 }
  0x66   :  { %751 = vmatpush3.bf16.msra.mxu0 %v816_v20 }
  0x67   :  { %752 = vmatprep.subr.bf16.mxu0 %v817_v21 }
  0x6a   :  { %753 = vmatpush3.bf16.msra.mxu0 %v817_v21 }
  0x6b   :  { %754 = vmatprep.subr.bf16.mxu0 %v818_v22 }
  0x6e   :  { %755 = vmatpush3.bf16.msra.mxu0 %v818_v22 }
  0x6f   :  { %756 = vmatprep.subr.bf16.mxu0 %v819_v36 }
  0x72   :  { %757 = vmatpush3.bf16.msra.mxu0 %v819_v36 }
  0x73   :  { %758 = vmatprep.subr.bf16.mxu0 %v820_v37 }
  0x76   :  { %759 = vmatpush3.bf16.msra.mxu0 %v820_v37 }
  0x77   :  { %760 = vmatprep.subr.bf16.mxu0 %v821_v38 }
  0x7a   :  { %761 = vmatpush3.bf16.msra.mxu0 %v821_v38 }
 0x11d   :  { %v724_v23 = vpop.f32.mrf.mxu0 }
 0x11e   :  { %v229_v26 = vadd.f32 %v724_v23, %v628_v24 }
 0x11f   :  { %v220_v25 = vpop.f32.mrf.mxu0 }
 0x120   :  { %v221_v28 = vadd.f32 %v628_v24, %v220_v25  ;;  %v236_v31 = vmax.f32 %v229_v26, 0.0 }
 0x121   :  { %v725_v27 = vpop.f32.mrf.mxu0 }
 0x122   :  { %v234_v32 = vmax.f32 %v221_v28, 0.0  ;;  %v238_v35 = vpack.c.bf16 %v236_v31, %v236_v31 }
 0x123   :  { %v223_v29 = vpop.f32.mrf.mxu0 }
 0x124   :  { %v224_v30 = vadd.f32 %v628_v24, %v223_v29 }
 0x126   :  { %v235_v33 = vmax.f32 %v224_v30, 0.0 }
 0x128   :  { %v237_v34 = vpack.c.bf16 %v235_v33, %v234_v32 }
 0x12a   :  { %742 = vmatprep.mubr.bf16.mxu1 %v237_v34 }
 0x12b   :  { %743 = vmatmul.mubr.bf16.vlgmr.msra.gmra.mxu1 %v238_v35 }
 0x12c   :  { %767 = vmatpush3.bf16.msra.mxu1 %v822_v39 }
 0x12d   :  { %768 = vmatprep.subr.bf16.mxu1 %v823_v40 }
 0x130   :  { %769 = vmatpush3.bf16.msra.mxu1 %v823_v40 }
 0x131   :  { %770 = vmatprep.subr.bf16.mxu1 %v824_v41 }
 0x134   :  { %771 = vmatpush3.bf16.msra.mxu1 %v824_v41 }
 0x135   :  { %772 = vmatprep.subr.bf16.mxu1 %v825_v42 }
 0x138   :  { %773 = vmatpush3.bf16.msra.mxu1 %v825_v42 }
 0x139   :  { %774 = vmatprep.subr.bf16.mxu1 %v826_v43 }
 0x13c   :  { %775 = vmatpush3.bf16.msra.mxu1 %v826_v43 }
 0x13d   :  { %776 = vmatprep.subr.bf16.mxu1 %v827_v57 }
 0x140   :  { %777 = vmatpush3.bf16.msra.mxu1 %v827_v57 }
 0x141   :  { %778 = vmatprep.subr.bf16.mxu1 %v828_v58 }
 0x144   :  { %779 = vmatpush3.bf16.msra.mxu1 %v828_v58 }
 0x145   :  { %780 = vmatprep.subr.bf16.mxu1 %v829_v59 }
 0x148   :  { %781 = vmatpush3.bf16.msra.mxu1 %v829_v59 }
 0x1eb   :  { %v744_v44 = vpop.f32.mrf.mxu1 }
 0x1ec   :  { %v353_v47 = vadd.f32 %v744_v44, %v639_v45 }
 0x1ed   :  { %v344_v46 = vpop.f32.mrf.mxu1 }
 0x1ee   :  { %v345_v49 = vadd.f32 %v639_v45, %v344_v46  ;;  %v360_v52 = vmax.f32 %v353_v47, 0.0 }
 0x1ef   :  { %v745_v48 = vpop.f32.mrf.mxu1 }
 0x1f0   :  { %v358_v53 = vmax.f32 %v345_v49, 0.0  ;;  %v362_v56 = vpack.c.bf16 %v360_v52, %v360_v52 }
 0x1f1   :  { %v347_v50 = vpop.f32.mrf.mxu1 }
 0x1f2   :  { %v348_v51 = vadd.f32 %v639_v45, %v347_v50 }
 0x1f4   :  { %v359_v54 = vmax.f32 %v348_v51, 0.0 }
 0x1f6   :  { %v361_v55 = vpack.c.bf16 %v359_v54, %v358_v53 }
 0x1f8   :  { %762 = vmatprep.mubr.bf16.mxu0 %v361_v55 }
 0x1f9   :  { %763 = vmatmul.mubr.bf16.vlgmr.msra.gmra.mxu0 %v362_v56 }
 0x2b9   :  { %v764_v60 = vpop.f32.mrf.mxu0 }
 0x2ba   :  { %v477_v63 = vadd.f32 %v764_v60, %v648_v61 }
 0x2bb   :  { %v468_v62 = vpop.f32.mrf.mxu0 }
 0x2bc   :  { %v469_v1 = vadd.f32 %v648_v61, %v468_v62  ;;  %v484_v4 = vmax.f32 %v477_v63, 0.0 }
 0x2bd   :  { %v765_v0 = vpop.f32.mrf.mxu0 }
 0x2be   :  { %v482_v5 = vmax.f32 %v469_v1, 0.0  ;;  %v486_v8 = vpack.c.bf16 %v484_v4, %v484_v4 }
 0x2bf   :  { %v471_v2 = vpop.f32.mrf.mxu0 }
 0x2c0   :  { %v472_v3 = vadd.f32 %v648_v61, %v471_v2 }
 0x2c2   :  { %v483_v6 = vmax.f32 %v472_v3, 0.0 }
 0x2c4   :  { %v485_v7 = vpack.c.bf16 %v483_v6, %v482_v5 }
 0x2c6   :  { %782 = vmatprep.mubr.bf16.mxu1 %v485_v7 }
 0x2c7   :  { %783 = vmatmul.mubr.bf16.vlgmr.msra.gmra.mxu1 %v486_v8 }
 0x387   :  { %v784_v10 = vpop.f32.mrf.mxu1 }
 0x388   :  { %v601_v11 = vadd.f32 %v784_v10, %v657_v9 }
 0x389   :  { %v592_v12 = vpop.f32.mrf.mxu1 }
 0x38a   :  { %608 = vst [vmem:[#allocation11 + $0x10] sm:$0xff] %v601_v11  ;;  %v593_v13 = vadd.f32 %v657_v9, %v592_v12 }
 0x38b   :  { %v785_v14 = vpop.f32.mrf.mxu1 }
 0x38c   :  { %606 = vst [vmem:[#allocation11] sm:$0xff] %v593_v13 }
 0x38d   :  { %v595_v15 = vpop.f32.mrf.mxu1 }
 0x38e   :  { %v596_v16 = vadd.f32 %v657_v9, %v595_v15 }
 0x390   :  { %607 = vst [vmem:[#allocation11 + $0x8] sm:$0xff] %v596_v16 }
 0x391   :  { %941 = shalt.err (!%p938_p1)
}
 0x392   :  { %s966_s8 = smov 128   ;;  %s967_s18 = smov 8  }
 0x393   :  { %620 = dma.vmem_to_hbm [thread:$0]  %s615_s16, 384, %s1072_s9, [#allocation4], %s966_s8, %s966_s8, %s967_s18  }
 0x394   :  { %956 = dma.done.wait [#allocation4], 384  }
 0x395   :  { %957 = vsyncadd [#allocation4], 4294966912 }
 0x396   :  { %624 = vsyncpa [#allocation3], 1 }
 0x397   :  { %625 = vsyncpa [#allocation6], 1 }
 0x398   :  { %626 = vsyncpa [#allocation9], 1 }
 0x399   :  { %627 = vsyncpa [#allocation4], 1 }

</bundles_post_ra>
